<compile_context>
chip_gen: v5e
topology: v5e:2x2
jax: 0.10.0
libtpu: 0.0.40
codegen_flags: <defaults>
</compile_context>

<pallas_src>
import functools

import jax
import jax.numpy as jnp
import numpy as np
from jax.experimental import pallas as pl
from jax.experimental.pallas import tpu as pltpu


def _goal_gvf_kernel(cum_ref, gp_ref, tgp_ref, act_ref, done_ref, valid_ref,
                     out_ref, *, n_step, discount):
    """Partial GoalGVF sums for one batch block.

    Block shapes:
      cum_ref   : (T, Bblk, C)      cumulant  (variables['goal'])
      gp_ref    : (T, Bblk, A*C)    variables['goal_predictions'] (A folded into lanes)
      tgp_ref   : (T, Bblk, A*C)    target_variables['goal_predictions']
      act_ref   : (T, Bblk, 1) i32  action
      done_ref  : (T, Bblk, 1) f32  done
      valid_ref : (P, Bblk, 1) f32  valid_from_done(done[:P]) (computed in wrapper)
      out_ref   : (1, 1, 6)    f32  [loss_num, loss_den, sum(delta), sum(cumulant),
                                     sum(pred), sum(target_pred)]
    """
    f32 = jnp.float32
    T = cum_ref.shape[0]
    C = cum_ref.shape[2]
    AC = gp_ref.shape[2]
    A = AC // C
    P = T - n_step                              # num_preds

    # ---- discount_cumulant_n_step, accumulated directly over the P rows ----
    ret = cum_ref[0:P, :, :].astype(f32)                      # (P, Bblk, C)
    done_n = done_ref[0:P, :, :].astype(f32)                  # (P, Bblk, 1)
    for n in range(1, n_step):                                # static -> unrolled
        ret = ret + (discount ** n) * cum_ref[n:n + P, :, :].astype(f32) * (1.0 - done_n)
        done_n = jnp.maximum(done_n, done_ref[n:n + P, :, :].astype(f32))

    # ---- select_at_indexes: per-action lane slice + vselect (A is small, static) ----
    act_p = act_ref[0:P, :, :]                                # (P, Bblk, 1) i32
    act_t = act_ref[n_step:n_step + P, :, :]                  # (P, Bblk, 1) i32
    pred = gp_ref[0:P, :, 0:C].astype(f32)                    # a == 0
    tpred = tgp_ref[n_step:n_step + P, :, 0:C].astype(f32)
    for a in range(1, A):                                     # static -> unrolled
        pred = jnp.where(act_p == a,
                         gp_ref[0:P, :, a * C:(a + 1) * C].astype(f32), pred)
        tpred = jnp.where(act_t == a,
                          tgp_ref[n_step:n_step + P, :, a * C:(a + 1) * C].astype(f32),
                          tpred)

    # ---- n-step TD target / delta ----
    y = ret + (1.0 - done_n) * (discount ** n_step) * tpred
    delta = y - pred                                          # (P, Bblk, C)

    valid = valid_ref[...].astype(f32)                        # (P, Bblk, 1)

    def _sc(x):                                               # full reduce -> (1, 1)
        return jnp.sum(x).reshape(1, 1)

    loss_num = _sc(0.5 * delta * delta * valid) * (1.0 / C)   # sum_pb(mean_c(.5 d^2)*valid)
    loss_den = _sc(valid)
    s_delta = _sc(delta)
    s_cum = _sc(cum_ref[...].astype(f32))
    s_pred = _sc(pred)
    s_tpred = _sc(tpred)

    # single fused store of all partial sums
    out_ref[0, :, :] = jnp.concatenate(
        [loss_num, loss_den, s_delta, s_cum, s_pred, s_tpred], axis=1)


def _choose_batch_block(T, P, C, AC, B, itemsize):
    """Pick a sublane-filling batch block that fits comfortably in VMEM."""
    # Approx VMEM bytes per batch element per pipeline buffer (includes the
    # 128-lane padding of the lane-1 act/done/valid tiles).
    per_b = T * (2 * AC + C) * itemsize + (2 * T + P) * 128 * 4
    budget = 12 * 1024 * 1024            # per buffer; ~24 MiB double-buffered
    bblk = (budget // max(per_b, 1)) // 8 * 8
    bblk = int(max(8, min(bblk, 256)))
    if B >= 16:                          # keep >= 2 grid steps for v7x's 2 TCs
        bblk = min(bblk, max(8, (-(-B // 2)) // 8 * 8))
    bblk = min(bblk, -(-B // 8) * 8)     # never exceed the padded batch
    return bblk


def _pad_batch(x, axis, b_pad):
    b = x.shape[axis]
    if b == b_pad:
        return x
    pads = [(0, 0)] * x.ndim
    pads[axis] = (0, b_pad - b)
    return jnp.pad(x, pads)


class GVF:
    """Abstract base class (mirrors the PyTorch GVF module: no parameters)."""

    def __init__(self):
        pass

    def forward(self, variables, target_variables, **kwargs):
        raise NotImplementedError

    def __call__(self, *args, **kwargs):
        return self.forward(*args, **kwargs)

    @property
    def batch_kwargs(self):
        return {}


class GoalGVF(GVF):
    """JAX/Pallas mirror of the PyTorch GoalGVF module."""

    def __init__(self, cumulant='goal', success_only=True, batch_T=None,
                 n_step_return=None, discount=None):
        super().__init__()
        self.cumulant = cumulant
        self.success_only = success_only
        self.batch_T = batch_T
        self.n_step_return = n_step_return
        self.discount = discount

    def forward(self, variables, target_variables, action, done, batch_T,
                n_step_return=None, discount=None, **kwargs):
        n_step_return = n_step_return if n_step_return is not None else self.n_step_return
        discount = discount if discount is not None else self.discount
        assert n_step_return is not None, 'either algo sets n_step_return or loaded in settings'
        assert discount is not None, 'either algo sets discount or loaded in settings'
        n_step = int(n_step_return)
        discount = float(discount)

        cumulant = variables[self.cumulant]                        # [T, B, C]
        assert cumulant.shape[0] == batch_T, 'data should only cover batch_T'
        goal_preds = variables['goal_predictions']                 # [T, B, A, C]
        target_goal_preds = target_variables['goal_predictions']   # [T, B, A, C]

        T, B, C = cumulant.shape
        A = goal_preds.shape[2]
        AC = A * C
        num_preds = T - n_step
        assert num_preds > 0, 'batch_T must exceed n_step_return'
        f32 = jnp.float32

        # ---- layout: keep native [T, B, ...]; flatten A into the lane axis ----
        gp_flat = goal_preds.reshape(T, B, AC)                     # contiguous, free
        tgp_flat = target_goal_preds.reshape(T, B, AC)
        act3 = action[:T].astype(jnp.int32)[..., None]             # [T, B, 1]
        done_f = done[:T].astype(f32)                              # [T, B]
        done3 = done_f[..., None]                                  # [T, B, 1]

        # valid_from_done (tiny, done-only) computed in plain JAX.
        if num_preds > 1:
            cs = jnp.minimum(jnp.cumsum(done_f[:num_preds - 1], axis=0), 1.0)
            valid = jnp.concatenate([jnp.ones((1, B), f32), 1.0 - cs], axis=0)
        else:
            valid = jnp.ones((1, B), f32)
        valid3 = valid[..., None]                                  # [P, B, 1]

        # ---- batch blocking (sublane-filling, VMEM-budgeted) + zero padding ----
        itemsize = jnp.dtype(goal_preds.dtype).itemsize
        bblk = _choose_batch_block(T, num_preds, C, AC, B, itemsize)
        b_pad = -(-B // bblk) * bblk
        nb = b_pad // bblk

        cum_p = _pad_batch(cumulant, 1, b_pad)
        gp_p = _pad_batch(gp_flat, 1, b_pad)
        tgp_p = _pad_batch(tgp_flat, 1, b_pad)
        act_p = _pad_batch(act3, 1, b_pad)
        done_p = _pad_batch(done3, 1, b_pad)
        valid_p = _pad_batch(valid3, 1, b_pad)

        kernel = functools.partial(_goal_gvf_kernel, n_step=n_step, discount=discount)

        per_block = pl.pallas_call(
            kernel,
            out_shape=jax.ShapeDtypeStruct((nb, 1, 6), f32),
            grid=(nb,),
            in_specs=[
                pl.BlockSpec((T, bblk, C), lambda b: (0, b, 0)),
                pl.BlockSpec((T, bblk, AC), lambda b: (0, b, 0)),
                pl.BlockSpec((T, bblk, AC), lambda b: (0, b, 0)),
                pl.BlockSpec((T, bblk, 1), lambda b: (0, b, 0)),
                pl.BlockSpec((T, bblk, 1), lambda b: (0, b, 0)),
                pl.BlockSpec((num_preds, bblk, 1), lambda b: (0, b, 0)),
            ],
            out_specs=pl.BlockSpec((1, 1, 6), lambda b: (b, 0, 0)),
            compiler_params=pltpu.CompilerParams(
                dimension_semantics=("parallel",),
                vmem_limit_bytes=32 * 1024 * 1024),
        )(cum_p, gp_p, tgp_p, act_p, done_p, valid_p)

        # ---- finish the (tiny) global reductions in plain JAX ----
        s = jnp.sum(per_block, axis=(0, 1))          # (6,)
        loss = s[0] / s[1]                           # valid_mean(losses, valid)
        n_pred_elems = float(num_preds * B * C)
        stats = dict(
            delta=s[2] / n_pred_elems,
            cumulant=s[3] / float(T * B * C),
            goal_predictions=s[4] / n_pred_elems,
            target_goal_predictions=s[5] / n_pred_elems,
            loss=loss,
        )
        return loss, stats

    @property
    def batch_kwargs(self):
        return dict(success_only=self.success_only)


def _reference_numpy(cumulant, gp, tgp, action, done, n_step, discount):
    """Pure-numpy mirror of the PyTorch GoalGVF.forward (for validation)."""
    cumulant = np.asarray(cumulant, np.float64)
    gp = np.asarray(gp, np.float64)
    tgp = np.asarray(tgp, np.float64)
    action = np.asarray(action)
    done = np.asarray(done, np.float64)

    T, B, C = cumulant.shape
    rlen = T - (n_step - 1)
    num_preds = T - n_step

    done_e = done[..., None]
    ret = cumulant[:rlen].copy()
    done_n = done_e[:rlen].copy()
    for n in range(1, n_step):
        ret = ret + (discount ** n) * cumulant[n:n + rlen] * (1.0 - done_n)
        done_n = np.maximum(done_n, done_e[n:n + rlen])

    ret_p = ret[:num_preds]
    done_n_p = done_n[:num_preds]

    t_act = action[n_step:n_step + num_preds]
    tgp_s = tgp[n_step:][:num_preds]
    idx_t = np.broadcast_to(t_act[..., None, None], (num_preds, B, 1, C))
    target_pred = np.take_along_axis(tgp_s, idx_t, axis=2)[:, :, 0, :]

    p_act = action[:num_preds]
    idx_p = np.broadcast_to(p_act[..., None, None], (num_preds, B, 1, C))
    pred = np.take_along_axis(gp[:num_preds], idx_p, axis=2)[:, :, 0, :]

    y = ret_p + (1.0 - done_n_p) * (discount ** n_step) * target_pred
    delta = y - pred
    losses = (0.5 * delta ** 2).mean(-1)

    d = done[:num_preds]
    valid = np.ones_like(d)
    if num_preds > 1:
        valid[1:] = 1.0 - np.minimum(np.cumsum(d[:-1], axis=0), 1.0)
    loss = (losses * valid).sum() / valid.sum()

    stats = dict(delta=delta.mean(), cumulant=cumulant.mean(),
                 goal_predictions=pred.mean(),
                 target_goal_predictions=target_pred.mean(), loss=loss)
    return loss, stats


if __name__ == "__main__":
    key = jax.random.PRNGKey(0)
    k1, k2, k3, k4, k5 = jax.random.split(key, 5)

    # small shapes: time=8, batch=2, actions=4, cumulant/goal dim=32
    T, B, A, C = 8, 2, 4, 32
    n_step, discount = 3, 0.95

    cumulant = jax.random.normal(k1, (T, B, C), dtype=jnp.float32)
    goal_predictions = jax.random.normal(k2, (T, B, A, C), dtype=jnp.float32)
    target_goal_predictions = jax.random.normal(k3, (T, B, A, C), dtype=jnp.float32)
    action = jax.random.randint(k4, (T, B), 0, A, dtype=jnp.int32)
    done = (jax.random.uniform(k5, (T, B)) < 0.2).astype(jnp.float32)

    variables = dict(goal=cumulant, goal_predictions=goal_predictions)
    target_variables = dict(goal_predictions=target_goal_predictions)

    gvf = GoalGVF(cumulant='goal', success_only=True,
                  n_step_return=n_step, discount=discount)
    assert gvf.batch_kwargs == dict(success_only=True)

    loss, stats = gvf(variables, target_variables, action=action, done=done,
                      batch_T=T)
    loss = jax.block_until_ready(loss)

    ref_loss, ref_stats = _reference_numpy(cumulant, goal_predictions,
                                           target_goal_predictions, action,
                                           done, n_step, discount)

    assert np.isfinite(float(loss))
    np.testing.assert_allclose(float(loss), ref_loss, rtol=1e-4, atol=1e-4)
    for name, ref_val in ref_stats.items():
        np.testing.assert_allclose(float(stats[name]), ref_val,
                                   rtol=1e-4, atol=1e-4)

    print("KERNEL_OK")
</pallas_src>

<mosaic_0001>
module attributes {stable_mosaic.version = 11 : i64} {
  func.func @_goal_gvf_kernel(%arg0: i32, %arg1: memref<8x8x32xf32, #tpu.memory_space<vmem>>, %arg2: memref<8x8x128xf32, #tpu.memory_space<vmem>>, %arg3: memref<8x8x128xf32, #tpu.memory_space<vmem>>, %arg4: memref<8x8x1xi32, #tpu.memory_space<vmem>>, %arg5: memref<8x8x1xf32, #tpu.memory_space<vmem>>, %arg6: memref<5x8x1xf32, #tpu.memory_space<vmem>>, %arg7: memref<1x1x6xf32, #tpu.memory_space<vmem>>) attributes {dimension_semantics = [#tpu.dimension_semantics<parallel>], iteration_bounds = array<i64: 1>, scalar_prefetch = 0 : i64, scratch_operands = 0 : i64, tpu.core_type = #tpu.core_type<tc>, window_params = [{transform_indices = @transform_0, window_bounds = array<i64: 8, 8, 32>}, {transform_indices = @transform_1, window_bounds = array<i64: 8, 8, 128>}, {transform_indices = @transform_2, window_bounds = array<i64: 8, 8, 128>}, {transform_indices = @transform_3, window_bounds = array<i64: 8, 8, 1>}, {transform_indices = @transform_4, window_bounds = array<i64: 8, 8, 1>}, {transform_indices = @transform_5, window_bounds = array<i64: 5, 8, 1>}, {transform_indices = @transform_6, window_bounds = array<i64: 1, 1, 6>}]} {
    %c0 = arith.constant 0 : index
    %c0_0 = arith.constant 0 : index
    %c0_1 = arith.constant 0 : index
    %0 = vector.load %arg1[%c0, %c0_0, %c0_1] : memref<8x8x32xf32, #tpu.memory_space<vmem>>, vector<5x8x32xf32>
    %c0_2 = arith.constant 0 : index
    %c0_3 = arith.constant 0 : index
    %c0_4 = arith.constant 0 : index
    %1 = vector.load %arg5[%c0_2, %c0_3, %c0_4] : memref<8x8x1xf32, #tpu.memory_space<vmem>>, vector<5x8x1xf32>
    %c1 = arith.constant 1 : index
    %c0_5 = arith.constant 0 : index
    %c0_6 = arith.constant 0 : index
    %2 = vector.load %arg1[%c1, %c0_5, %c0_6] : memref<8x8x32xf32, #tpu.memory_space<vmem>>, vector<5x8x32xf32>
    %cst = arith.constant 0.949999988 : f32
    %3 = vector.broadcast %cst : f32 to vector<5x8x32xf32>
    %4 = arith.mulf %3, %2 : vector<5x8x32xf32>
    %cst_7 = arith.constant 1.000000e+00 : f32
    %5 = vector.broadcast %cst_7 : f32 to vector<5x8x1xf32>
    %6 = arith.subf %5, %1 : vector<5x8x1xf32>
    %7 = vector.broadcast %6 : vector<5x8x1xf32> to vector<5x8x32xf32>
    %8 = arith.mulf %4, %7 : vector<5x8x32xf32>
    %9 = arith.addf %0, %8 : vector<5x8x32xf32>
    %c1_8 = arith.constant 1 : index
    %c0_9 = arith.constant 0 : index
    %c0_10 = arith.constant 0 : index
    %10 = vector.load %arg5[%c1_8, %c0_9, %c0_10] : memref<8x8x1xf32, #tpu.memory_space<vmem>>, vector<5x8x1xf32>
    %11 = arith.maximumf %1, %10 : vector<5x8x1xf32>
    %c2 = arith.constant 2 : index
    %c0_11 = arith.constant 0 : index
    %c0_12 = arith.constant 0 : index
    %12 = vector.load %arg1[%c2, %c0_11, %c0_12] : memref<8x8x32xf32, #tpu.memory_space<vmem>>, vector<5x8x32xf32>
    %cst_13 = arith.constant 0.902499973 : f32
    %13 = vector.broadcast %cst_13 : f32 to vector<5x8x32xf32>
    %14 = arith.mulf %13, %12 : vector<5x8x32xf32>
    %cst_14 = arith.constant 1.000000e+00 : f32
    %15 = vector.broadcast %cst_14 : f32 to vector<5x8x1xf32>
    %16 = arith.subf %15, %11 : vector<5x8x1xf32>
    %17 = vector.broadcast %16 : vector<5x8x1xf32> to vector<5x8x32xf32>
    %18 = arith.mulf %14, %17 : vector<5x8x32xf32>
    %19 = arith.addf %9, %18 : vector<5x8x32xf32>
    %c2_15 = arith.constant 2 : index
    %c0_16 = arith.constant 0 : index
    %c0_17 = arith.constant 0 : index
    %20 = vector.load %arg5[%c2_15, %c0_16, %c0_17] : memref<8x8x1xf32, #tpu.memory_space<vmem>>, vector<5x8x1xf32>
    %21 = arith.maximumf %11, %20 : vector<5x8x1xf32>
    %c0_18 = arith.constant 0 : index
    %c0_19 = arith.constant 0 : index
    %c0_20 = arith.constant 0 : index
    %22 = vector.load %arg4[%c0_18, %c0_19, %c0_20] : memref<8x8x1xi32, #tpu.memory_space<vmem>>, vector<5x8x1xi32>
    %c3 = arith.constant 3 : index
    %c0_21 = arith.constant 0 : index
    %c0_22 = arith.constant 0 : index
    %23 = vector.load %arg4[%c3, %c0_21, %c0_22] : memref<8x8x1xi32, #tpu.memory_space<vmem>>, vector<5x8x1xi32>
    %c0_23 = arith.constant 0 : index
    %c0_24 = arith.constant 0 : index
    %c0_25 = arith.constant 0 : index
    %24 = vector.load %arg2[%c0_23, %c0_24, %c0_25] : memref<8x8x128xf32, #tpu.memory_space<vmem>>, vector<5x8x32xf32>
    %c3_26 = arith.constant 3 : index
    %c0_27 = arith.constant 0 : index
    %c0_28 = arith.constant 0 : index
    %25 = vector.load %arg3[%c3_26, %c0_27, %c0_28] : memref<8x8x128xf32, #tpu.memory_space<vmem>>, vector<5x8x32xf32>
    %c1_i32 = arith.constant 1 : i32
    %26 = vector.broadcast %c1_i32 : i32 to vector<5x8x1xi32>
    %27 = arith.cmpi eq, %22, %26 : vector<5x8x1xi32>
    %c0_29 = arith.constant 0 : index
    %c0_30 = arith.constant 0 : index
    %c32 = arith.constant 32 : index
    %28 = vector.load %arg2[%c0_29, %c0_30, %c32] : memref<8x8x128xf32, #tpu.memory_space<vmem>>, vector<5x8x32xf32>
    %29 = vector.shape_cast %27 : vector<5x8x1xi1> to vector<5x8x1xi1>
    %30 = vector.broadcast %29 : vector<5x8x1xi1> to vector<5x8x32xi1>
    %31 = arith.select %30, %28, %24 : vector<5x8x32xi1>, vector<5x8x32xf32>
    %c1_i32_31 = arith.constant 1 : i32
    %32 = vector.broadcast %c1_i32_31 : i32 to vector<5x8x1xi32>
    %33 = arith.cmpi eq, %23, %32 : vector<5x8x1xi32>
    %c3_32 = arith.constant 3 : index
    %c0_33 = arith.constant 0 : index
    %c32_34 = arith.constant 32 : index
    %34 = vector.load %arg3[%c3_32, %c0_33, %c32_34] : memref<8x8x128xf32, #tpu.memory_space<vmem>>, vector<5x8x32xf32>
    %35 = vector.shape_cast %33 : vector<5x8x1xi1> to vector<5x8x1xi1>
    %36 = vector.broadcast %35 : vector<5x8x1xi1> to vector<5x8x32xi1>
    %37 = arith.select %36, %34, %25 : vector<5x8x32xi1>, vector<5x8x32xf32>
    %c2_i32 = arith.constant 2 : i32
    %38 = vector.broadcast %c2_i32 : i32 to vector<5x8x1xi32>
    %39 = arith.cmpi eq, %22, %38 : vector<5x8x1xi32>
    %c0_35 = arith.constant 0 : index
    %c0_36 = arith.constant 0 : index
    %c64 = arith.constant 64 : index
    %40 = vector.load %arg2[%c0_35, %c0_36, %c64] : memref<8x8x128xf32, #tpu.memory_space<vmem>>, vector<5x8x32xf32>
    %41 = vector.shape_cast %39 : vector<5x8x1xi1> to vector<5x8x1xi1>
    %42 = vector.broadcast %41 : vector<5x8x1xi1> to vector<5x8x32xi1>
    %43 = arith.select %42, %40, %31 : vector<5x8x32xi1>, vector<5x8x32xf32>
    %c2_i32_37 = arith.constant 2 : i32
    %44 = vector.broadcast %c2_i32_37 : i32 to vector<5x8x1xi32>
    %45 = arith.cmpi eq, %23, %44 : vector<5x8x1xi32>
    %c3_38 = arith.constant 3 : index
    %c0_39 = arith.constant 0 : index
    %c64_40 = arith.constant 64 : index
    %46 = vector.load %arg3[%c3_38, %c0_39, %c64_40] : memref<8x8x128xf32, #tpu.memory_space<vmem>>, vector<5x8x32xf32>
    %47 = vector.shape_cast %45 : vector<5x8x1xi1> to vector<5x8x1xi1>
    %48 = vector.broadcast %47 : vector<5x8x1xi1> to vector<5x8x32xi1>
    %49 = arith.select %48, %46, %37 : vector<5x8x32xi1>, vector<5x8x32xf32>
    %c3_i32 = arith.constant 3 : i32
    %50 = vector.broadcast %c3_i32 : i32 to vector<5x8x1xi32>
    %51 = arith.cmpi eq, %22, %50 : vector<5x8x1xi32>
    %c0_41 = arith.constant 0 : index
    %c0_42 = arith.constant 0 : index
    %c96 = arith.constant 96 : index
    %52 = vector.load %arg2[%c0_41, %c0_42, %c96] : memref<8x8x128xf32, #tpu.memory_space<vmem>>, vector<5x8x32xf32>
    %53 = vector.shape_cast %51 : vector<5x8x1xi1> to vector<5x8x1xi1>
    %54 = vector.broadcast %53 : vector<5x8x1xi1> to vector<5x8x32xi1>
    %55 = arith.select %54, %52, %43 : vector<5x8x32xi1>, vector<5x8x32xf32>
    %c3_i32_43 = arith.constant 3 : i32
    %56 = vector.broadcast %c3_i32_43 : i32 to vector<5x8x1xi32>
    %57 = arith.cmpi eq, %23, %56 : vector<5x8x1xi32>
    %c3_44 = arith.constant 3 : index
    %c0_45 = arith.constant 0 : index
    %c96_46 = arith.constant 96 : index
    %58 = vector.load %arg3[%c3_44, %c0_45, %c96_46] : memref<8x8x128xf32, #tpu.memory_space<vmem>>, vector<5x8x32xf32>
    %59 = vector.shape_cast %57 : vector<5x8x1xi1> to vector<5x8x1xi1>
    %60 = vector.broadcast %59 : vector<5x8x1xi1> to vector<5x8x32xi1>
    %61 = arith.select %60, %58, %49 : vector<5x8x32xi1>, vector<5x8x32xf32>
    %cst_47 = arith.constant 1.000000e+00 : f32
    %62 = vector.broadcast %cst_47 : f32 to vector<5x8x1xf32>
    %63 = arith.subf %62, %21 : vector<5x8x1xf32>
    %cst_48 = arith.constant 8.573750e-01 : f32
    %64 = vector.broadcast %cst_48 : f32 to vector<5x8x1xf32>
    %65 = arith.mulf %63, %64 : vector<5x8x1xf32>
    %66 = vector.broadcast %65 : vector<5x8x1xf32> to vector<5x8x32xf32>
    %67 = arith.mulf %66, %61 : vector<5x8x32xf32>
    %68 = arith.addf %19, %67 : vector<5x8x32xf32>
    %69 = arith.subf %68, %55 : vector<5x8x32xf32>
    %c0_49 = arith.constant 0 : index
    %c0_50 = arith.constant 0 : index
    %c0_51 = arith.constant 0 : index
    %70 = vector.load %arg6[%c0_49, %c0_50, %c0_51] : memref<5x8x1xf32, #tpu.memory_space<vmem>>, vector<5x8x1xf32>
    %cst_52 = arith.constant 5.000000e-01 : f32
    %71 = vector.broadcast %cst_52 : f32 to vector<5x8x32xf32>
    %72 = arith.mulf %71, %69 : vector<5x8x32xf32>
    %73 = arith.mulf %72, %69 : vector<5x8x32xf32>
    %74 = vector.broadcast %70 : vector<5x8x1xf32> to vector<5x8x32xf32>
    %75 = arith.mulf %73, %74 : vector<5x8x32xf32>
    %76 = vector.shape_cast %75 : vector<5x8x32xf32> to vector<1x5x8x32xf32>
    %cst_53 = arith.constant dense<0.000000e+00> : vector<1xf32>
    %77 = vector.multi_reduction <add>, %76, %cst_53 [1, 2, 3] : vector<1x5x8x32xf32> to vector<1xf32>
    %78 = vector.shape_cast %77 : vector<1xf32> to vector<1x1x1x1xf32>
    %79 = vector.extract %78[0, 0, 0, 0] : f32 from vector<1x1x1x1xf32>
    %80 = vector.broadcast %79 : f32 to vector<1x1xf32>
    %cst_54 = arith.constant 3.125000e-02 : f32
    %81 = vector.broadcast %cst_54 : f32 to vector<1x1xf32>
    %82 = arith.mulf %80, %81 : vector<1x1xf32>
    %83 = vector.shape_cast %70 : vector<5x8x1xf32> to vector<1x5x8x1xf32>
    %cst_55 = arith.constant dense<0.000000e+00> : vector<1xf32>
    %84 = vector.multi_reduction <add>, %83, %cst_55 [1, 2, 3] : vector<1x5x8x1xf32> to vector<1xf32>
    %85 = vector.shape_cast %84 : vector<1xf32> to vector<1x1x1x1xf32>
    %86 = vector.extract %85[0, 0, 0, 0] : f32 from vector<1x1x1x1xf32>
    %87 = vector.broadcast %86 : f32 to vector<1x1xf32>
    %88 = vector.shape_cast %69 : vector<5x8x32xf32> to vector<1x5x8x32xf32>
    %cst_56 = arith.constant dense<0.000000e+00> : vector<1xf32>
    %89 = vector.multi_reduction <add>, %88, %cst_56 [1, 2, 3] : vector<1x5x8x32xf32> to vector<1xf32>
    %90 = vector.shape_cast %89 : vector<1xf32> to vector<1x1x1x1xf32>
    %91 = vector.extract %90[0, 0, 0, 0] : f32 from vector<1x1x1x1xf32>
    %92 = vector.broadcast %91 : f32 to vector<1x1xf32>
    %c0_57 = arith.constant 0 : index
    %c0_58 = arith.constant 0 : index
    %c0_59 = arith.constant 0 : index
    %93 = vector.load %arg1[%c0_57, %c0_58, %c0_59] : memref<8x8x32xf32, #tpu.memory_space<vmem>>, vector<8x8x32xf32>
    %94 = vector.shape_cast %93 : vector<8x8x32xf32> to vector<1x8x8x32xf32>
    %cst_60 = arith.constant dense<0.000000e+00> : vector<1xf32>
    %95 = vector.multi_reduction <add>, %94, %cst_60 [1, 2, 3] : vector<1x8x8x32xf32> to vector<1xf32>
    %96 = vector.shape_cast %95 : vector<1xf32> to vector<1x1x1x1xf32>
    %97 = vector.extract %96[0, 0, 0, 0] : f32 from vector<1x1x1x1xf32>
    %98 = vector.broadcast %97 : f32 to vector<1x1xf32>
    %99 = vector.shape_cast %55 : vector<5x8x32xf32> to vector<1x5x8x32xf32>
    %cst_61 = arith.constant dense<0.000000e+00> : vector<1xf32>
    %100 = vector.multi_reduction <add>, %99, %cst_61 [1, 2, 3] : vector<1x5x8x32xf32> to vector<1xf32>
    %101 = vector.shape_cast %100 : vector<1xf32> to vector<1x1x1x1xf32>
    %102 = vector.extract %101[0, 0, 0, 0] : f32 from vector<1x1x1x1xf32>
    %103 = vector.broadcast %102 : f32 to vector<1x1xf32>
    %104 = vector.shape_cast %61 : vector<5x8x32xf32> to vector<1x5x8x32xf32>
    %cst_62 = arith.constant dense<0.000000e+00> : vector<1xf32>
    %105 = vector.multi_reduction <add>, %104, %cst_62 [1, 2, 3] : vector<1x5x8x32xf32> to vector<1xf32>
    %106 = vector.shape_cast %105 : vector<1xf32> to vector<1x1x1x1xf32>
    %107 = vector.extract %106[0, 0, 0, 0] : f32 from vector<1x1x1x1xf32>
    %108 = vector.broadcast %107 : f32 to vector<1x1xf32>
    %109 = tpu.concatenate %82, %87, %92, %98, %103, %108 in 1 : vector<1x1xf32>, vector<1x1xf32>, vector<1x1xf32>, vector<1x1xf32>, vector<1x1xf32>, vector<1x1xf32> -> vector<1x6xf32>
    %c0_63 = arith.constant 0 : index
    %c0_64 = arith.constant 0 : index
    %c0_65 = arith.constant 0 : index
    %110 = vector.load %arg7[%c0_63, %c0_64, %c0_65] : memref<1x1x6xf32, #tpu.memory_space<vmem>>, vector<1x1x6xf32>
    %111 = vector.shape_cast %110 : vector<1x1x6xf32> to vector<1x6xf32>
    %112 = vector.shape_cast %109 : vector<1x6xf32> to vector<1x1x6xf32>
    tpu.vector_store %arg7[%c0_63, %c0_64, %c0_65], %112 {strides = array<i32>} : memref<1x1x6xf32, #tpu.memory_space<vmem>>, vector<1x1x6xf32>,
    return
  }
  func.func @transform_0(%arg0: i32) -> (i32, i32, i32) {
    %c0_i32 = arith.constant 0 : i32
    %c0_i32_0 = arith.constant 0 : i32
    %c0_i32_1 = arith.constant 0 : i32
    return %c0_i32, %arg0, %c0_i32_0 : i32, i32, i32
  }
  func.func @transform_1(%arg0: i32) -> (i32, i32, i32) {
    %c0_i32 = arith.constant 0 : i32
    %c0_i32_0 = arith.constant 0 : i32
    %c0_i32_1 = arith.constant 0 : i32
    return %c0_i32, %arg0, %c0_i32_0 : i32, i32, i32
  }
  func.func @transform_2(%arg0: i32) -> (i32, i32, i32) {
    %c0_i32 = arith.constant 0 : i32
    %c0_i32_0 = arith.constant 0 : i32
    %c0_i32_1 = arith.constant 0 : i32
    return %c0_i32, %arg0, %c0_i32_0 : i32, i32, i32
  }
  func.func @transform_3(%arg0: i32) -> (i32, i32, i32) {
    %c0_i32 = arith.constant 0 : i32
    %c0_i32_0 = arith.constant 0 : i32
    %c0_i32_1 = arith.constant 0 : i32
    return %c0_i32, %arg0, %c0_i32_0 : i32, i32, i32
  }
  func.func @transform_4(%arg0: i32) -> (i32, i32, i32) {
    %c0_i32 = arith.constant 0 : i32
    %c0_i32_0 = arith.constant 0 : i32
    %c0_i32_1 = arith.constant 0 : i32
    return %c0_i32, %arg0, %c0_i32_0 : i32, i32, i32
  }
  func.func @transform_5(%arg0: i32) -> (i32, i32, i32) {
    %c0_i32 = arith.constant 0 : i32
    %c0_i32_0 = arith.constant 0 : i32
    %c0_i32_1 = arith.constant 0 : i32
    return %c0_i32, %arg0, %c0_i32_0 : i32, i32, i32
  }
  func.func @transform_6(%arg0: i32) -> (i32, i32, i32) {
    %c0_i32 = arith.constant 0 : i32
    %c0_i32_0 = arith.constant 0 : i32
    %c0_i32_1 = arith.constant 0 : i32
    return %arg0, %c0_i32, %c0_i32_0 : i32, i32, i32
  }
}

</mosaic_0001>

<bundles_post_ra>
// kernel: tpu_custom_call.1
= control target key start
LH: loop header
LB: loop body
LE: loop exit
PB: predicated region body
PF: predicated region fallthrough
CT: control target
= control target key end

     0   :  { %11 = vsyncpa [#allocation3], 0  ;;  %s1394_s0 = inlined_call_operand.vmem [shape: f32[8,8,32], index: 0, kind: input, shape index: {}]   ;;  %s1395_s1 = inlined_call_operand.vmem [shape: f32[8,8,128], index: 1, kind: input, shape index: {}]   ;;  %s1396_s2 = inlined_call_operand.hbm [shape: f32[8,8,128], index: 2, kind: input, shape index: {}]   ;;  %s1397_s3 = inlined_call_operand.vmem [shape: s32[8,8,1], index: 3, kind: input, shape index: {}]   ;;  %s1398_s4 = inlined_call_operand.vmem [shape: f32[8,8,1], index: 4, kind: input, shape index: {}]   ;;  %s1399_s5 = inlined_call_operand.vmem [shape: f32[5,8,1], index: 5, kind: input, shape index: {}]   ;;  %s1400_s6 = inlined_call_operand.hbm [shape: f32[1,1,6], index: 6, kind: output, shape index: {}]  }
   0x1   :  { %12 = vsyncpa [#allocation4], 0  ;;  %s21_s23 = sshll.u32 %s1396_s2, 4  ;;  %s938_s24 = smov [#allocation2]   ;;  %s22_s23 = int_to_ptr.hbm [resolvable:$true] %s21_s23 }
   0x2   :  { %s23_s25 = sshll.u32 %s938_s24, 4  ;;  %s939_s26 = smov 128   ;;  %s24_s25 = int_to_ptr.vmem [resolvable:$true] %s23_s25 }
   0x3   :  { %s940_s27 = smov 8  }
   0x4   :  { %29 = dma.hbm_to_vmem [thread:$0]  %s22_s23, 1024, %s24_s25, [#allocation3], %s939_s26, %s939_s26, %s940_s27  }
   0x5   :  { %934 = dma.done.wait [#allocation3], 1024  }
   0x6   :  { %935 = vsyncadd [#allocation3], 4294966272  ;;  %v941_v0 = vmov 0   ;;  %v988_v1 = vld [vmem:[%s1398_s4 + $0x20] sm:$0xff]  ;;  %v993_v2 = vld [vmem:[%s1398_s4 + $0x10] sm:$0xff]  ;;  %s942_s30 = smov 32  }
   0x7   :  { %885 = vset.pattern.permute.xlu2 %v941_v0  ;;  %884 = vset.pattern.permute.xlu1 %v941_v0  ;;  %v65_v3 = vsub.f32 1.0, %v988_v1  ;;  %v63_v4 = vsub.f32 1.0, %v993_v2  ;;  %v45_v5 = vld [vmem:[%s1398_s4] sm:$0xff]  ;;  %v845_v6 = vld [vmem:[%s1398_s4 + $0x8] sm:$0xff]  ;;  %v1008_v9 = vld [vmem:[%s1398_s4 + $0x18] sm:$0xff]  ;;  %s830_s19 = sshll.u32 %s1400_s6, 4  ;;  %s831_s19 = int_to_ptr.hbm [resolvable:$true] %s830_s19 }
   0x8   :  { %883 = vset.pattern.permute.xlu0 %v941_v0  ;;  %v61_v7 = vsub.f32 1.0, %v45_v5  ;;  %v1003_v8 = vmax.f32 %v45_v5, %v845_v6  ;;  %v64_v10 = vsub.f32 1.0, %v1008_v9  ;;  %v62_v12 = vsub.f32 1.0, %v845_v6  ;;  %v1029_v19 = vld [vmem:[%s1398_s4 + $0x28] sm:$0xff]  ;;  %v1034_v20 = vld [vmem:[%s1397_s3] sm:$0xff]  ;;  %v1053_v26 = vld [vmem:[%s1397_s3 + $0x18] sm:$0xff] }
   0x9   :  { %88 = vperm.xlu2 %885, %v65_v3   ;;  %78 = vperm.xlu1 %884, %v63_v4   ;;  %v1014_v13 = vmax.f32 %v993_v2, %v1008_v9  ;;  %v1018_v14 = vmax.f32 %v1008_v9, %v988_v1  ;;  %v1021_v15 = vmax.f32 %v845_v6, %v993_v2  ;;  %v1039_v21 = vld [vmem:[%s1397_s3 + $0x8] sm:$0xff]  ;;  %vm196_vm0 = vcmp.eq.s32.totalorder %v1034_v20, 1  ;;  %v1058_v27 = vld [vmem:[%s1397_s3 + $0x20] sm:$0xff]  ;;  %v1063_v28 = vld [vmem:[%s1397_s3 + $0x10] sm:$0xff]  ;;  %s943_s21 = smov [#allocation5]  }
   0xa   :  { %68 = vperm.xlu0 %883, %v61_v7   ;;  %v123_v11 = vsub.f32 1.0, %v1003_v8  ;;  %v1043_v22 = vmax.f32 %v988_v1, %v1029_v19  ;;  %vm197_vm1 = vcmp.eq.s32.totalorder %v1039_v21, 1  ;;  %v201_v23 = vsel %vm196_vm0, 1, %v941_v0  ;;  %v1074_v32 = vld [vmem:[%s1395_s1 + $0x8] sm:$0xff]  ;;  %v1079_v33 = vld [vmem:[%s1395_s1 + $0x10] sm:$0xff]  ;;  %v1084_v34 = vld [vmem:[%s1395_s1] sm:$0xff] }
   0xb   :  { %v125_v16 = vsub.f32 1.0, %v1014_v13  ;;  %v126_v17 = vsub.f32 1.0, %v1018_v14  ;;  %v124_v18 = vsub.f32 1.0, %v1021_v15  ;;  %v202_v24 = vsel %vm197_vm1, 1, %v941_v0  ;;  %v1095_v35 = vld [vmem:[%s1395_s1 + $0x20] sm:$0xff]  ;;  %v1100_v36 = vld [vmem:[%s1395_s1 + $0x18] sm:$0xff] }
   0xc   :  { %v127_v25 = vsub.f32 1.0, %v1043_v22  ;;  %vm199_vm2 = vcmp.eq.s32.totalorder %v1053_v26, 1  ;;  %vm200_vm3 = vcmp.eq.s32.totalorder %v1058_v27, 1  ;;  %vm198_vm4 = vcmp.eq.s32.totalorder %v1063_v28, 1  ;;  %v1105_v37 = vld [vmem:[%s1397_s3 + $0x28] sm:$0xff]  ;;  %v1110_v38 = vld [vmem:[%s1397_s3 + $0x30] sm:$0xff] }
   0xd   :  { %v204_v29 = vsel %vm199_vm2, 1, %v941_v0  ;;  %v205_v30 = vsel %vm200_vm3, 1, %v941_v0  ;;  %v203_v31 = vsel %vm198_vm4, 1, %v941_v0  ;;  %vm253_vm5 = vcmp.eq.s32.totalorder %v1105_v37, 1  ;;  %v1123_v41 = vld [vmem:[%s1397_s3 + $0x38] sm:$0xff]  ;;  %v1128_v43 = vld [vmem:[#allocation2 + $0x20] sm:$0xff] }
   0xe   :  { %vm254_vm6 = vcmp.eq.s32.totalorder %v1110_v38, 1  ;;  %v258_v39 = vsel %vm253_vm5, 1, %v941_v0  ;;  %vm255_vm7 = vcmp.eq.s32.totalorder %v1123_v41, 1  ;;  %v1126_v42 = vld [vmem:[#allocation2 + $0x18] sm:$0xff]  ;;  %v1135_v45 = vld [vmem:[#allocation2 + $0x30] sm:$0xff]  ;;  %v1139_v47 = vld [vmem:[#allocation2 + $0x28] sm:$0xff] }
   0xf   :  { %v259_v40 = vsel %vm254_vm6, 1, %v941_v0  ;;  %v260_v44 = vsel %vm255_vm7, 1, %v941_v0  ;;  %v1137_v46 = vld [vmem:[#allocation2 + $0x38] sm:$0xff]  ;;  %vm307_vm8 = vcmp.eq.s32.totalorder %v1039_v21, 2  ;;  %vm308_vm9 = vcmp.eq.s32.totalorder %v1063_v28, 2  ;;  %v1166_v58 = vld [vmem:[%s1394_s0 + $0x8] sm:$0xff] }
  0x10   :  { %vm306_vm10 = vcmp.eq.s32.totalorder %v1034_v20, 2  ;;  %v312_v48 = vsel %vm307_vm8, 1, %v941_v0  ;;  %v313_v49 = vsel %vm308_vm9, 1, %v941_v0  ;;  %vm310_vm11 = vcmp.eq.s32.totalorder %v1058_v27, 2  ;;  %v1171_v60 = vld [vmem:[%s1394_s0 + $0x10] sm:$0xff]  ;;  %v1178_v4 = vld [vmem:[%s1394_s0] sm:$0xff] }
  0x11   :  { %83 = vperm.xlu1 %884, %v64_v10   ;;  %130 = vperm.xlu2 %885, %v123_v11   ;;  %v311_v50 = vsel %vm306_vm10, 1, %v941_v0  ;;  %vm309_vm12 = vcmp.eq.s32.totalorder %v1053_v26, 2  ;;  %v315_v51 = vsel %vm310_vm11, 1, %v941_v0  ;;  %vm365_vm13 = vcmp.eq.s32.totalorder %v1123_v41, 2  ;;  %v1183_v6 = vld [vmem:[%s1394_s0 + $0x28] sm:$0xff]  ;;  %v1188_v7 = vld [vmem:[%s1394_s0 + $0x20] sm:$0xff] }
  0x12   :  { %73 = vperm.xlu0 %883, %v62_v12   ;;  %v314_v52 = vsel %vm309_vm12, 1, %v941_v0  ;;  %vm363_vm14 = vcmp.eq.s32.totalorder %v1105_v37, 2  ;;  %v370_v54 = vsel %vm365_vm13, 1, %v941_v0  ;;  %vm364_vm15 = vcmp.eq.s32.totalorder %v1110_v38, 2  ;;  %s828_s22 = sshll.u32 %s943_s21, 4  ;;  %s829_s22 = int_to_ptr.vmem [resolvable:$true] %s828_s22 }
  0x13   :  { %v368_v55 = vsel %vm363_vm14, 1, %v941_v0  ;;  %v369_v57 = vsel %vm364_vm15, 1, %v941_v0  ;;  %v56_v61 = vmul.f32 0.95, %v1166_v58  ;;  %v118_v62 = vmul.f32 0.9025, %v1171_v60 }
  0x14   :  { %v59_v12 = vmul.f32 0.95, %v1188_v7  ;;  %vm418_vm8 = vcmp.eq.s32.totalorder %v1063_v28, 3  ;;  %vm417_vm11 = vcmp.eq.s32.totalorder %v1039_v21, 3  ;;  %vm416_vm12 = vcmp.eq.s32.totalorder %v1034_v20, 3 }
  0x15   :  { %vm471_vm13 = vcmp.eq.s32.totalorder %v1053_v26, 3  ;;  %v422_v28 = vsel %vm417_vm11, 1, %v941_v0  ;;  %vm420_vm14 = vcmp.eq.s32.totalorder %v1058_v27, 3  ;;  %v169_v20 = vmax.f32 %v1003_v8, %v993_v2  ;;  %v859_v27 = vld [vmem:[%s1398_s4 + $0x30] sm:$0xff] }
  0x16   :  { %v425_v21 = vsel %vm420_vm14, 1, %v941_v0  ;;  %vm474_vm15 = vcmp.eq.s32.totalorder %v1110_v38, 3  ;;  %v172_v2 = vmax.f32 %v1018_v14, %v1029_v19  ;;  %v173_v38 = vmax.f32 %v1043_v22, %v859_v27 }
  0x17   :  { %v479_v8 = vsel %vm474_vm15, 1, %v941_v0 }
  0x18   :  { %v530_v14 = vsub.f32 1.0, %v173_v38 }
  0x19   :  { %140 = vperm.xlu1 %884, %v125_v16   ;;  %145 = vperm.xlu2 %885, %v126_v17   ;;  %v1195_v16 = vld [vmem:[%s1394_s0 + $0x18] sm:$0xff] }
  0x1a   :  { %135 = vperm.xlu0 %883, %v124_v18   ;;  %v535_v19 = vmul.f32 0.857375, %v530_v14 }
  0x21   :  { %207 = vperm.xlu1 %884, %v201_v23   ;;  %210 = vperm.xlu2 %885, %v202_v24   ;;  %v121_v23 = vmul.f32 0.9025, %v1183_v6 }
  0x22   :  { %150 = vperm.xlu0 %883, %v127_v25   ;;  %v58_v25 = vmul.f32 0.95, %v1195_v16 }
  0x29   :  { %216 = vperm.xlu1 %884, %v204_v29   ;;  %219 = vperm.xlu2 %885, %v205_v30  }
  0x2a   :  { %213 = vperm.xlu0 %883, %v203_v31   ;;  %v57_v31 = vmul.f32 0.95, %v1171_v60 }
  0x31   :  { %233 = vrot.lane.b32.xlu1 %v1074_v32, %s942_s30  ;;  %235 = vrot.lane.b32.xlu2 %v1079_v33, %s942_s30 }
  0x32   :  { %231 = vrot.lane.b32.xlu0 %v1084_v34, %s942_s30 }
  0x39   :  { %239 = vrot.lane.b32.xlu1 %v1095_v35, %s942_s30  ;;  %262 = vperm.xlu2 %885, %v204_v29  }
  0x3a   :  { %237 = vrot.lane.b32.xlu0 %v1100_v36, %s942_s30 }
  0x41   :  { %268 = vperm.xlu1 %884, %v258_v39   ;;  %271 = vperm.xlu2 %885, %v259_v40  }
  0x42   :  { %265 = vperm.xlu0 %883, %v205_v30  }
  0x49   :  { %286 = vrot.lane.b32.xlu1 %v1126_v42, %s942_s30  ;;  %288 = vrot.lane.b32.xlu2 %v1128_v43, %s942_s30 }
  0x4a   :  { %274 = vperm.xlu0 %883, %v260_v44  }
  0x51   :  { %292 = vrot.lane.b32.xlu1 %v1135_v45, %s942_s30  ;;  %294 = vrot.lane.b32.xlu2 %v1137_v46, %s942_s30 }
  0x52   :  { %290 = vrot.lane.b32.xlu0 %v1139_v47, %s942_s30 }
  0x59   :  { %320 = vperm.xlu1 %884, %v312_v48   ;;  %323 = vperm.xlu2 %885, %v313_v49   ;;  %v120_v48 = vmul.f32 0.9025, %v1188_v7 }
  0x5a   :  { %317 = vperm.xlu0 %883, %v311_v50  }
  0x61   :  { %329 = vperm.xlu1 %884, %v315_v51   ;;  %375 = vperm.xlu2 %885, %v315_v51   ;;  %v119_v51 = vmul.f32 0.9025, %v1195_v16 }
  0x62   :  { %326 = vperm.xlu0 %883, %v314_v52  }
  0x63   :  { %v89_v53 = vpop.permute.xlu2 %88 }
  0x69   :  { %372 = vperm.xlu1 %884, %v314_v52   ;;  %384 = vperm.xlu2 %885, %v370_v54  }
  0x6a   :  { %378 = vperm.xlu0 %883, %v368_v55  }
  0x6b   :  { %v131_v56 = vpop.permute.xlu2 %130 }
  0x6c   :  { %v153_v10 = vmul.f32 %v131_v56, %v118_v62 }
  0x71   :  { %381 = vperm.xlu1 %884, %v369_v57  }
  0x73   :  { %v146_v59 = vpop.permute.xlu2 %145 }
  0x74   :  { %v156_v39 = vmul.f32 %v146_v59, %v121_v23 }
  0x7b   :  { %v79_v63 = vpop.permute.xlu1 %78  ;;  %v211_v17 = vpop.permute.xlu2 %210 }
  0x7c   :  { %v69_v3 = vpop.permute.xlu0 %68  ;;  %v93_v44 = vmul.f32 %v79_v63, %v58_v25  ;;  %v1213_v63 = vld [vmem:[%s1394_s0 + $0x30] sm:$0xff]  ;;  %vm222_vm1 = vcmp.eq.s32.totalorder %v211_v17, 1 }
  0x7d   :  { %v91_v5 = vmul.f32 %v69_v3, %v56_v61  ;;  %v60_v61 = vmul.f32 0.95, %v1183_v6 }
  0x7e   :  { %v98_v55 = vadd.f32 %v1171_v60, %v93_v44 }
  0x7f   :  { %v96_v11 = vadd.f32 %v91_v5, %v1178_v4 }
  0x81   :  { %v1197_v18 = vadd.f32 %v153_v10, %v96_v11  ;;  %v95_v10 = vmul.f32 %v89_v53, %v60_v61  ;;  %v122_v11 = vmul.f32 0.9025, %v1213_v63 }
  0x83   :  { %v84_v24 = vpop.permute.xlu1 %83  ;;  %v220_v52 = vpop.permute.xlu2 %219 }
  0x84   :  { %v94_v29 = vmul.f32 %v84_v24, %v59_v12  ;;  %v74_v30 = vpop.permute.xlu0 %73  ;;  %v100_v24 = vadd.f32 %v95_v10, %v1188_v7  ;;  %vm225_vm3 = vcmp.eq.s32.totalorder %v220_v52, 1 }
  0x85   :  { %v92_v50 = vmul.f32 %v74_v30, %v57_v31 }
  0x86   :  { %v99_v40 = vadd.f32 %v1195_v16, %v94_v29 }
  0x87   :  { %v97_v59 = vadd.f32 %v1166_v58, %v92_v50 }
  0x88   :  { %v1204_v49 = vadd.f32 %v156_v39, %v99_v40 }
  0x8b   :  { %v141_v54 = vpop.permute.xlu1 %140  ;;  %v236_v25 = vpop.permute.xlu2 %235 }
  0x8c   :  { %v155_v56 = vmul.f32 %v141_v54, %v120_v48  ;;  %v136_v57 = vpop.permute.xlu0 %135 }
  0x8d   :  { %v154_v62 = vmul.f32 %v136_v57, %v119_v51 }
  0x8e   :  { %v1215_v3 = vadd.f32 %v155_v56, %v98_v55 }
  0x8f   :  { %v1217_v5 = vadd.f32 %v154_v62, %v97_v59 }
  0x93   :  { %v208_v12 = vpop.permute.xlu1 %207  ;;  %v263_v44 = vpop.permute.xlu2 %262 }
  0x94   :  { %v151_v23 = vpop.permute.xlu0 %150  ;;  %vm221_vm2 = vcmp.eq.s32.totalorder %v208_v12, 1  ;;  %vm276_vm6 = vcmp.eq.s32.totalorder %v263_v44, 1  ;;  %v421_v44 = vsel %vm416_vm12, 1, %v941_v0 }
  0x95   :  { %v157_v29 = vmul.f32 %v151_v23, %v122_v11 }
  0x97   :  { %v1221_v30 = vadd.f32 %v157_v29, %v100_v24 }
  0x9b   :  { %v217_v31 = vpop.permute.xlu1 %216  ;;  %v272_v54 = vpop.permute.xlu2 %271 }
  0x9c   :  { %v214_v39 = vpop.permute.xlu0 %213  ;;  %vm224_vm4 = vcmp.eq.s32.totalorder %v217_v31, 1  ;;  %vm279_vm9 = vcmp.eq.s32.totalorder %v272_v54, 1  ;;  %v526_v54 = vsub.f32 1.0, %v169_v20 }
  0x9d   :  { %vm223_vm0 = vcmp.eq.s32.totalorder %v214_v39, 1  ;;  %v423_v39 = vsel %vm418_vm8, 1, %v941_v0 }
  0x9e   :  { %v248_v40 = vsel %vm223_vm0, %v1079_v33, %v236_v25  ;;  %vm473_vm0 = vcmp.eq.s32.totalorder %v1105_v37, 3 }
  0x9f   :  { %345 = vrot.lane.b32.xlu1 %v248_v40, %s942_s30 }
  0xa3   :  { %v234_v53 = vpop.permute.xlu1 %233  ;;  %v289_v61 = vpop.permute.xlu2 %288 }
  0xa4   :  { %v232_v48 = vpop.permute.xlu0 %231  ;;  %v247_v50 = vsel %vm222_vm1, %v1074_v32, %v234_v53  ;;  %v170_v53 = vmax.f32 %v1021_v15, %v1008_v9  ;;  %v531_v15 = vmul.f32 0.857375, %v526_v54  ;;  %vm475_vm1 = vcmp.eq.s32.totalorder %v1123_v41, 3 }
  0xa5   :  { %343 = vrot.lane.b32.xlu0 %v247_v50, %s942_s30  ;;  %v246_v51 = vsel %vm221_vm2, %v1084_v34, %v232_v48  ;;  %v476_v48 = vsel %vm471_vm13, 1, %v941_v0  ;;  %v480_v37 = vsel %vm475_vm1, 1, %v941_v0 }
  0xa6   :  { %341 = vrot.lane.b32.xlu2 %v246_v51, %s942_s30  ;;  %v527_v50 = vsub.f32 1.0, %v170_v53  ;;  %v171_v51 = vmax.f32 %v1014_v13, %v988_v1  ;;  %v478_v1 = vsel %vm473_vm0, 1, %v941_v0  ;;  %v529_v13 = vsub.f32 1.0, %v172_v2  ;;  %v617_v53 = vld [vmem:[%s1399_s5 + $0x8] sm:$0xff] }
  0xa8   :  { %v532_v26 = vmul.f32 0.857375, %v527_v50  ;;  %v528_v9 = vsub.f32 1.0, %v171_v51 }
  0xab   :  { %v240_v55 = vpop.permute.xlu1 %239  ;;  %v295_v23 = vpop.permute.xlu2 %294 }
  0xac   :  { %v238_v56 = vpop.permute.xlu0 %237  ;;  %v250_v57 = vsel %vm225_vm3, %v1095_v35, %v240_v55  ;;  %v533_v55 = vmul.f32 0.857375, %v528_v9 }
  0xad   :  { %349 = vrot.lane.b32.xlu0 %v250_v57, %s942_s30  ;;  %v249_v17 = vsel %vm224_vm4, %v1100_v36, %v238_v56  ;;  %v534_v56 = vmul.f32 0.857375, %v529_v13 }
  0xae   :  { %347 = vrot.lane.b32.xlu2 %v249_v17, %s942_s30 }
  0xb3   :  { %v269_v59 = vpop.permute.xlu1 %268  ;;  %v324_v57 = vpop.permute.xlu2 %323 }
  0xb4   :  { %v266_v62 = vpop.permute.xlu0 %265  ;;  %vm278_vm10 = vcmp.eq.s32.totalorder %v269_v59, 1  ;;  %vm333_vm11 = vcmp.eq.s32.totalorder %v324_v57, 1 }
  0xb5   :  { %vm277_vm5 = vcmp.eq.s32.totalorder %v266_v62, 1 }
  0xb6   :  { %v302_v10 = vsel %vm277_vm5, %v1128_v43, %v289_v61  ;;  %vm682_vm5 = vcmask 7168  }
  0xb7   :  { %398 = vrot.lane.b32.xlu1 %v302_v10, %s942_s30  ;;  %v684_v50 = vsel %vm682_vm5, %v617_v53, 0.0 }
  0xbb   :  { %v287_v52 = vpop.permute.xlu1 %286  ;;  %v376_v61 = vpop.permute.xlu2 %375 }
  0xbc   :  { %v275_v11 = vpop.permute.xlu0 %274  ;;  %v301_v12 = vsel %vm276_vm6, %v1126_v42, %v287_v52  ;;  %vm387_vm4 = vcmp.eq.s32.totalorder %v376_v61, 1 }
  0xbd   :  { %vm280_vm7 = vcmp.eq.s32.totalorder %v275_v11, 1  ;;  %396 = vrot.lane.b32.xlu0 %v301_v12, %s942_s30 }
  0xbe   :  { %v305_v24 = vsel %vm280_vm7, %v1137_v46, %v295_v23 }
  0xbf   :  { %404 = vrot.lane.b32.xlu1 %v305_v24, %s942_s30 }
  0xc3   :  { %v293_v25 = vpop.permute.xlu1 %292  ;;  %v385_v10 = vpop.permute.xlu2 %384 }
  0xc4   :  { %v291_v29 = vpop.permute.xlu0 %290  ;;  %v304_v31 = vsel %vm279_vm9, %v1135_v45, %v293_v25  ;;  %vm390_vm7 = vcmp.eq.s32.totalorder %v385_v10, 1 }
  0xc5   :  { %402 = vrot.lane.b32.xlu0 %v304_v31, %s942_s30  ;;  %v303_v40 = vsel %vm278_vm10, %v1139_v47, %v291_v29 }
  0xc6   :  { %400 = vrot.lane.b32.xlu2 %v303_v40, %s942_s30 }
  0xc7   :  { %433 = vperm.xlu1 %884, %v423_v39  }
  0xcb   :  { %v321_v17 = vpop.permute.xlu1 %320 }
  0xcc   :  { %v318_v59 = vpop.permute.xlu0 %317  ;;  %vm332_vm8 = vcmp.eq.s32.totalorder %v321_v17, 1 }
  0xcd   :  { %430 = vperm.xlu0 %883, %v422_v28   ;;  %vm331_vm3 = vcmp.eq.s32.totalorder %v318_v59, 1 }
  0xce   :  { %427 = vperm.xlu2 %885, %v421_v44  }
  0xcf   :  { %482 = vperm.xlu1 %884, %v476_v48  }
  0xd3   :  { %v330_v62 = vpop.permute.xlu1 %329 }
  0xd4   :  { %v327_v52 = vpop.permute.xlu0 %326  ;;  %vm335_vm10 = vcmp.eq.s32.totalorder %v330_v62, 1 }
  0xd5   :  { %439 = vperm.xlu0 %883, %v425_v21   ;;  %vm334_vm12 = vcmp.eq.s32.totalorder %v327_v52, 1 }
  0xd6   :  { %436 = vperm.xlu2 %885, %v476_v48  }
  0xd7   :  { %543 = vperm.xlu1 %884, %v532_v26  }
  0xdb   :  { %v373_v12 = vpop.permute.xlu1 %372 }
  0xdc   :  { %v379_v41 = vpop.permute.xlu0 %378  ;;  %vm386_vm6 = vcmp.eq.s32.totalorder %v373_v12, 1 }
  0xdd   :  { %538 = vperm.xlu0 %883, %v531_v15   ;;  %vm388_vm2 = vcmp.eq.s32.totalorder %v379_v41, 1 }
  0xde   :  { %485 = vperm.xlu2 %885, %v425_v21   ;;  %v616_v21 = vld [vmem:[%s1399_s5] sm:$0xff] }
  0xdf   :  { %548 = vperm.xlu1 %884, %v533_v55   ;;  %v683_v51 = vsel %vm682_vm5, %v616_v21, 0.0 }
  0xe0   :  { %v685_v54 = vadd.f32 %v684_v50, %v683_v51 }
  0xe3   :  { %v382_v24 = vpop.permute.xlu1 %381 }
  0xe4   :  { %vm389_vm9 = vcmp.eq.s32.totalorder %v382_v24, 1 }
  0xe5   :  { %491 = vperm.xlu0 %883, %v479_v8  }
  0xe6   :  { %488 = vperm.xlu2 %885, %v478_v1  }
  0xed   :  { %553 = vperm.xlu0 %883, %v534_v56  }
  0xee   :  { %494 = vperm.xlu2 %885, %v480_v37  }
  0xf5   :  { %558 = vperm.xlu0 %883, %v535_v19  }
 0x100   :  { %v342_v11 = vpop.permute.xlu2 %341 }
 0x101   :  { %v356_v40 = vsel %vm331_vm3, %v1084_v34, %v342_v11 }
 0x108   :  { %v348_v23 = vpop.permute.xlu2 %347 }
 0x109   :  { %v359_v1 = vsel %vm334_vm12, %v1100_v36, %v348_v23  ;;  %vm819_vm12 = vcmask 39936  }
 0x111   :  { %v346_v25 = vpop.permute.xlu1 %345 }
 0x112   :  { %v358_v8 = vsel %vm333_vm11, %v1079_v33, %v346_v25  ;;  %vm817_vm11 = vcmask 31744  }
 0x117   :  { %v344_v22 = vpop.permute.xlu0 %343 }
 0x118   :  { %v357_v15 = vsel %vm332_vm8, %v1074_v32, %v344_v22  ;;  %vm661_vm8 = vcmask 261120  }
 0x11f   :  { %v350_v31 = vpop.permute.xlu0 %349 }
 0x120   :  { %v401_v0 = vpop.permute.xlu2 %400  ;;  %v360_v2 = vsel %vm335_vm10, %v1095_v35, %v350_v31  ;;  %vm815_vm10 = vcmask 23552  }
 0x121   :  { %v413_v29 = vsel %vm388_vm2, %v1139_v47, %v401_v0 }
 0x122   :  { %510 = vrot.lane.b32.xlu2 %v413_v29, %s942_s30 }
 0x128   :  { %v428_v13 = vpop.permute.xlu2 %427 }
 0x129   :  { %v399_v39 = vpop.permute.xlu1 %398  ;;  %vm441_vm14 = vcmp.eq.s32.totalorder %v428_v13, 1 }
 0x12a   :  { %451 = vrot.lane.b32.xlu2 %v356_v40, %s942_s30  ;;  %v412_v28 = vsel %vm387_vm4, %v1128_v43, %v399_v39 }
 0x12b   :  { %508 = vrot.lane.b32.xlu1 %v412_v28, %s942_s30  ;;  %v1313_v28 = vld [vmem:[%s1399_s5 + $0x18] sm:$0xff] }
 0x12f   :  { %v397_v44 = vpop.permute.xlu0 %396 }
 0x130   :  { %v411_v48 = vsel %vm386_vm6, %v1126_v42, %v397_v44  ;;  %v437_v27 = vpop.permute.xlu2 %436 }
 0x131   :  { %v405_v20 = vpop.permute.xlu1 %404  ;;  %506 = vrot.lane.b32.xlu0 %v411_v48, %s942_s30  ;;  %vm444_vm2 = vcmp.eq.s32.totalorder %v437_v27, 1  ;;  %v736_v27 = vsel %vm661_vm8, %v1188_v7, 0.0 }
 0x132   :  { %v415_v26 = vsel %vm390_vm7, %v1137_v46, %v405_v20 }
 0x133   :  { %514 = vrot.lane.b32.xlu2 %v415_v26, %s942_s30 }
 0x137   :  { %v403_v9 = vpop.permute.xlu0 %402 }
 0x138   :  { %v414_v55 = vsel %vm389_vm9, %v1135_v45, %v403_v9  ;;  %v486_v56 = vpop.permute.xlu2 %485  ;;  %vm813_vm9 = vcmask 15360  }
 0x139   :  { %453 = vrot.lane.b32.xlu0 %v357_v15, %s942_s30  ;;  %512 = vrot.lane.b32.xlu1 %v414_v55, %s942_s30  ;;  %v434_v17 = vpop.permute.xlu1 %433  ;;  %vm497_vm1 = vcmp.eq.s32.totalorder %v486_v56, 1  ;;  %v732_v55 = vsel %vm661_vm8, %v1171_v60, 0.0  ;;  %v728_v60 = vld [vmem:[%s1394_s0 + $0x38] sm:$0xff] }
 0x13a   :  { %vm443_vm0 = vcmp.eq.s32.totalorder %v434_v17, 1 }
 0x13b   :  { %459 = vrot.lane.b32.xlu2 %v360_v2, %s942_s30 }
 0x13f   :  { %v431_v38 = vpop.permute.xlu0 %430 }
 0x140   :  { %v489_v37 = vpop.permute.xlu2 %488  ;;  %vm442_vm15 = vcmp.eq.s32.totalorder %v431_v38, 1 }
 0x141   :  { %455 = vrot.lane.b32.xlu1 %v358_v8, %s942_s30  ;;  %vm498_vm13 = vcmp.eq.s32.totalorder %v489_v37, 1  ;;  %v483_v52 = vpop.permute.xlu1 %482 }
 0x142   :  { %vm496_vm4 = vcmp.eq.s32.totalorder %v483_v52, 1 }
 0x143   :  { %638 = vperm.xlu2 %885, %v617_v53  }
 0x147   :  { %v440_v14 = vpop.permute.xlu0 %439 }
 0x148   :  { %v495_v19 = vpop.permute.xlu2 %494  ;;  %vm445_vm3 = vcmp.eq.s32.totalorder %v440_v14, 1 }
 0x149   :  { %457 = vrot.lane.b32.xlu1 %v359_v1, %s942_s30  ;;  %v544_v12 = vpop.permute.xlu1 %543  ;;  %vm500_vm6 = vcmp.eq.s32.totalorder %v495_v19, 1  ;;  %v734_v1 = vsel %vm661_vm8, %v1195_v16, 0.0  ;;  %v742_v19 = vsel %vm661_vm8, %v728_v60, 0.0 }
 0x14f   :  { %v539_v61 = vpop.permute.xlu0 %538 }
 0x151   :  { %633 = vperm.xlu1 %884, %v616_v21   ;;  %v549_v23 = vpop.permute.xlu1 %548 }
 0x157   :  { %v492_v11 = vpop.permute.xlu0 %491 }
 0x158   :  { %vm499_vm7 = vcmp.eq.s32.totalorder %v492_v11, 1 }
 0x15f   :  { %v554_v41 = vpop.permute.xlu0 %553 }
 0x167   :  { %v559_v24 = vpop.permute.xlu0 %558 }
 0x17c   :  { %v511_v57 = vpop.permute.xlu2 %510 }
 0x17d   :  { %v523_v59 = vsel %vm498_vm13, %v1139_v47, %v511_v57  ;;  %vm821_vm13 = vcmask 40960  }
 0x17e   :  { %v563_v51 = vmul.f32 %v549_v23, %v523_v59 }
 0x184   :  { %v452_v62 = vpop.permute.xlu2 %451 }
 0x185   :  { %v466_v10 = vsel %vm441_vm14, %v1084_v34, %v452_v62  ;;  %v618_v34 = vld [vmem:[%s1399_s5 + $0x10] sm:$0xff] }
 0x186   :  { %596 = vrot.lane.b32.xlu0 %v466_v10, %s942_s30  ;;  %v686_v47 = vsel %vm682_vm5, %v618_v34, 0.0 }
 0x187   :  { %v1308_v40 = vadd.f32 %v686_v47, %v685_v54 }
 0x18d   :  { %v515_v39 = vpop.permute.xlu2 %514 }
 0x195   :  { %v460_v53 = vpop.permute.xlu2 %459 }
 0x196   :  { %v470_v26 = vsel %vm445_vm3, %v1095_v35, %v460_v53 }
 0x19d   :  { %v509_v22 = vpop.permute.xlu1 %508  ;;  %v639_v2 = vpop.permute.xlu2 %638 }
 0x19e   :  { %v522_v48 = vsel %vm497_vm1, %v1128_v43, %v509_v22  ;;  %v525_v43 = vsel %vm500_vm6, %v1137_v46, %v515_v39  ;;  %v730_v46 = vsel %vm661_vm8, %v1166_v58, 0.0  ;;  %v740_v58 = vsel %vm661_vm8, %v1213_v63, 0.0 }
 0x19f   :  { %v562_v20 = vmul.f32 %v544_v12, %v522_v48  ;;  %v565_v9 = vmul.f32 %v559_v24, %v525_v43 }
 0x1a3   :  { %v507_v0 = vpop.permute.xlu0 %506 }
 0x1ab   :  { %v513_v25 = vpop.permute.xlu1 %512  ;;  %v454_v29 = vpop.permute.xlu0 %453 }
 0x1ac   :  { %v467_v31 = vsel %vm442_vm15, %v1074_v32, %v454_v29  ;;  %v524_v35 = vsel %vm499_vm7, %v1135_v45, %v513_v25  ;;  %v729_v45 = vsel %vm661_vm8, %v1178_v4, 0.0  ;;  %v738_v4 = vsel %vm661_vm8, %v1183_v6, 0.0 }
 0x1ad   :  { %598 = vrot.lane.b32.xlu1 %v467_v31, %s942_s30  ;;  %v731_v15 = vadd.f32 %v730_v46, %v729_v45  ;;  %v688_v6 = vsel %vm682_vm5, %v1313_v28, 0.0 }
 0x1af   :  { %v733_v8 = vadd.f32 %v732_v55, %v731_v15 }
 0x1b1   :  { %v735_v13 = vadd.f32 %v734_v1, %v733_v8 }
 0x1b3   :  { %v456_v44 = vpop.permute.xlu1 %455  ;;  %v737_v38 = vadd.f32 %v736_v27, %v735_v13 }
 0x1b4   :  { %v468_v32 = vsel %vm443_vm0, %v1079_v33, %v456_v44  ;;  %v521_v33 = vsel %vm496_vm4, %v1126_v42, %v507_v0  ;;  %v620_v42 = vld [vmem:[%s1399_s5 + $0x20] sm:$0xff] }
 0x1b5   :  { %600 = vrot.lane.b32.xlu0 %v468_v32, %s942_s30  ;;  %648 = vperm.xlu1 %884, %v1313_v28   ;;  %v561_v54 = vmul.f32 %v539_v61, %v521_v33  ;;  %v739_v37 = vadd.f32 %v738_v4, %v737_v38  ;;  %v689_v61 = vadd.f32 %v688_v6, %v1308_v40  ;;  %v690_v63 = vsel %vm682_vm5, %v620_v42, 0.0 }
 0x1b7   :  { %v741_v16 = vadd.f32 %v740_v58, %v739_v37  ;;  %v691_v62 = vadd.f32 %v690_v63, %v689_v61 }
 0x1b9   :  { %v743_v57 = vadd.f32 %v742_v19, %v741_v16 }
 0x1bb   :  { %v458_v50 = vpop.permute.xlu1 %457 }
 0x1bc   :  { %v469_v21 = vsel %vm444_vm2, %v1100_v36, %v458_v50  ;;  %v564_v36 = vmul.f32 %v554_v41, %v524_v35 }
 0x1bd   :  { %602 = vrot.lane.b32.xlu2 %v469_v21, %s942_s30  ;;  %604 = vrot.lane.b32.xlu0 %v470_v26, %s942_s30 }
 0x1be   :  { %573 = vrot.lane.b32.xlu1 %v562_v20, %s942_s30 }
 0x1c3   :  { %v634_v56 = vpop.permute.xlu1 %633 }
 0x1c5   :  { %575 = vrot.lane.b32.xlu2 %v563_v51, %s942_s30  ;;  %571 = vrot.lane.b32.xlu0 %v561_v54, %s942_s30 }
 0x1c6   :  { %579 = vrot.lane.b32.xlu1 %v565_v9, %s942_s30 }
 0x1cd   :  { %577 = vrot.lane.b32.xlu2 %v564_v36, %s942_s30  ;;  %643 = vperm.xlu0 %883, %v618_v34  }
 0x1ce   :  { %780 = vrot.lane.b32.xlu1 %v522_v48, %s942_s30 }
 0x1d5   :  { %653 = vperm.xlu2 %885, %v620_v42   ;;  %778 = vrot.lane.b32.xlu0 %v521_v33, %s942_s30 }
 0x1d6   :  { %786 = vrot.lane.b32.xlu1 %v525_v43, %s942_s30 }
 0x1dd   :  { %782 = vrot.lane.b32.xlu2 %v523_v59, %s942_s30  ;;  %784 = vrot.lane.b32.xlu0 %v524_v35, %s942_s30 }
 0x1f8   :  { %v597_v17 = vpop.permute.xlu0 %596 }
 0x1f9   :  { %v754_v16 = vsel %vm661_vm8, %v597_v17, 0.0 }
 0x206   :  { %744 = vadd.xlane.f32.xlu2 %v743_v57 }
 0x207   :  { %692 = vadd.xlane.f32.xlu0 %v691_v62 }
 0x217   :  { %v1353_v14 = vpop.permute.xlu2 %602 }
 0x21f   :  { %v599_v7 = vpop.permute.xlu1 %598  ;;  %v576_v59 = vpop.permute.xlu2 %575 }
 0x220   :  { %v588_v0 = vadd.f32 %v576_v59, %v1215_v3  ;;  %v755_v4 = vsel %vm661_vm8, %v599_v7, 0.0 }
 0x221   :  { %v756_v61 = vadd.f32 %v755_v4, %v754_v16 }
 0x227   :  { %v649_v10 = vpop.permute.xlu1 %648  ;;  %v601_v52 = vpop.permute.xlu0 %600 }
 0x228   :  { %v578_v11 = vpop.permute.xlu2 %577  ;;  %v613_v25 = vsub.f32 %v588_v0, %v601_v52  ;;  %v757_v19 = vsel %vm661_vm8, %v601_v52, 0.0 }
 0x229   :  { %v589_v24 = vadd.f32 %v578_v11, %v1204_v49  ;;  %v758_v62 = vadd.f32 %v757_v19, %v756_v61 }
 0x22a   :  { %v623_v28 = vmul.f32 0.5, %v613_v25  ;;  %v705_v20 = vsel %vm661_vm8, %v613_v25, 0.0 }
 0x22b   :  { %v614_v29 = vsub.f32 %v589_v24, %v1353_v14 }
 0x22c   :  { %v628_v43 = vmul.f32 %v623_v28, %v613_v25 }
 0x22d   :  { %v624_v44 = vmul.f32 0.5, %v614_v29  ;;  %v707_v35 = vsel %vm661_vm8, %v614_v29, 0.0 }
 0x22f   :  { %v605_v41 = vpop.permute.xlu0 %604  ;;  %v629_v26 = vmul.f32 %v624_v44, %v614_v29 }
 0x230   :  { %v574_v12 = vpop.permute.xlu1 %573  ;;  %v654_v42 = vpop.permute.xlu2 %653 }
 0x231   :  { %v587_v23 = vadd.f32 %v574_v12, %v1217_v5  ;;  %v659_v46 = vmul.f32 %v649_v10, %v629_v26  ;;  %v761_v12 = vsel %vm661_vm8, %v605_v41, 0.0 }
 0x233   :  { %v612_v22 = vsub.f32 %v587_v23, %v599_v7  ;;  %v667_v37 = vsel %vm661_vm8, %v659_v46, 0.0  ;;  %v759_v7 = vsel %vm661_vm8, %v1353_v14, 0.0 }
 0x235   :  { %v622_v31 = vmul.f32 0.5, %v612_v22  ;;  %v703_v49 = vsel %vm661_vm8, %v612_v22, 0.0 }
 0x237   :  { %v572_v47 = vpop.permute.xlu0 %571  ;;  %v627_v32 = vmul.f32 %v622_v31, %v612_v22  ;;  %v760_v22 = vadd.f32 %v759_v7, %v758_v62 }
 0x238   :  { %v580_v34 = vpop.permute.xlu1 %579  ;;  %v586_v40 = vadd.f32 %v572_v47, %v1197_v18  ;;  %v783_v10 = vpop.permute.xlu2 %782 }
 0x239   :  { %v590_v39 = vadd.f32 %v580_v34, %v1221_v30  ;;  %v657_v30 = vmul.f32 %v639_v2, %v627_v32  ;;  %v762_v29 = vadd.f32 %v761_v12, %v760_v22 }
 0x23a   :  { %v611_v5 = vsub.f32 %v586_v40, %v597_v17  ;;  %v796_v17 = vsel %vm661_vm8, %v783_v10, 0.0 }
 0x23b   :  { %v615_v53 = vsub.f32 %v590_v39, %v605_v41  ;;  %v663_v55 = vsel %vm661_vm8, %v657_v30, 0.0 }
 0x23c   :  { %v621_v50 = vmul.f32 0.5, %v611_v5  ;;  %v702_v3 = vsel %vm661_vm8, %v611_v5, 0.0 }
 0x23d   :  { %v625_v48 = vmul.f32 0.5, %v615_v53  ;;  %v704_v21 = vadd.f32 %v703_v49, %v702_v3  ;;  %v709_v8 = vsel %vm661_vm8, %v615_v53, 0.0 }
 0x23e   :  { %v626_v33 = vmul.f32 %v621_v50, %v611_v5 }
 0x23f   :  { %v644_v51 = vpop.permute.xlu0 %643  ;;  %v706_v18 = vadd.f32 %v705_v20, %v704_v21  ;;  %v630_v36 = vmul.f32 %v625_v48, %v615_v53 }
 0x240   :  { %v656_v54 = vmul.f32 %v634_v56, %v626_v33  ;;  %v658_v9 = vmul.f32 %v644_v51, %v628_v43  ;;  %v781_v38 = vpop.permute.xlu1 %780 }
 0x241   :  { %v708_v45 = vadd.f32 %v707_v35, %v706_v18  ;;  %v660_v27 = vmul.f32 %v654_v42, %v630_v36  ;;  %v794_v63 = vsel %vm661_vm8, %v781_v38, 0.0 }
 0x242   :  { %v662_v15 = vsel %vm661_vm8, %v656_v54, 0.0  ;;  %v665_v2 = vsel %vm661_vm8, %v658_v9, 0.0 }
 0x243   :  { %v664_v1 = vadd.f32 %v663_v55, %v662_v15  ;;  %v710_v13 = vadd.f32 %v709_v8, %v708_v45  ;;  %v669_v6 = vsel %vm661_vm8, %v660_v27, 0.0 }
 0x245   :  { %v666_v56 = vadd.f32 %v665_v2, %v664_v1  ;;  %711 = vadd.xlane.f32.xlu1 %v710_v13 }
 0x247   :  { %v779_v58 = vpop.permute.xlu0 %778  ;;  %v668_v60 = vadd.f32 %v667_v37, %v666_v56 }
 0x248   :  { %v793_v57 = vsel %vm661_vm8, %v779_v58, 0.0  ;;  %v787_v52 = vpop.permute.xlu1 %786 }
 0x249   :  { %v670_v59 = vadd.f32 %v669_v6, %v668_v60  ;;  %v795_v11 = vadd.f32 %v794_v63, %v793_v57  ;;  %v800_v31 = vsel %vm661_vm8, %v787_v52, 0.0 }
 0x24b   :  { %671 = vadd.xlane.f32.xlu2 %v670_v59  ;;  %v797_v23 = vadd.f32 %v796_v17, %v795_v11 }
 0x24f   :  { %v785_v24 = vpop.permute.xlu0 %784 }
 0x250   :  { %v798_v0 = vsel %vm661_vm8, %v785_v24, 0.0 }
 0x251   :  { %v799_v25 = vadd.f32 %v798_v0, %v797_v23 }
 0x253   :  { %763 = vadd.xlane.f32.xlu2 %v762_v29  ;;  %v801_v34 = vadd.f32 %v800_v31, %v799_v25 }
 0x255   :  { %802 = vadd.xlane.f32.xlu0 %v801_v34 }
 0x279   :  { %v745_v39 = vpop.xlane.xlu2 %744 }
 0x27a   :  { %v693_v47 = vpop.xlane.xlu0 %692  ;;  %v746_v40 = vrot.slane %v745_v39, 4 }
 0x27b   :  { %v694_v14 = vrot.slane %v693_v47, 4 }
 0x27c   :  { %v747_v53 = vadd.f32 %v746_v40, %v745_v39 }
 0x27d   :  { %v695_v44 = vadd.f32 %v694_v14, %v693_v47 }
 0x27e   :  { %v748_v3 = vrot.slane %v747_v53, 2 }
 0x27f   :  { %v696_v5 = vrot.slane %v695_v44, 2 }
 0x280   :  { %v749_v43 = vadd.f32 %v748_v3, %v747_v53 }
 0x281   :  { %v697_v21 = vadd.f32 %v696_v5, %v695_v44 }
 0x282   :  { %v750_v42 = vrot.slane %v749_v43, 1 }
 0x283   :  { %v698_v18 = vrot.slane %v697_v21, 1 }
 0x284   :  { %v751_v2 = vadd.f32 %v750_v42, %v749_v43 }
 0x285   :  { %v699_v55 = vadd.f32 %v698_v18, %v697_v21 }
 0x2b8   :  { %v712_v41 = vpop.xlane.xlu1 %711 }
 0x2b9   :  { %v713_v28 = vrot.slane %v712_v41, 4 }
 0x2bb   :  { %v714_v32 = vadd.f32 %v713_v28, %v712_v41 }
 0x2bd   :  { %v715_v48 = vrot.slane %v714_v32, 2 }
 0x2be   :  { %v672_v49 = vpop.xlane.xlu2 %671 }
 0x2bf   :  { %v673_v50 = vrot.slane %v672_v49, 4  ;;  %v716_v26 = vadd.f32 %v715_v48, %v714_v32 }
 0x2c1   :  { %v674_v20 = vadd.f32 %v673_v50, %v672_v49  ;;  %v717_v35 = vrot.slane %v716_v26, 1 }
 0x2c3   :  { %v675_v33 = vrot.slane %v674_v20, 2  ;;  %v718_v13 = vadd.f32 %v717_v35, %v716_v26 }
 0x2c5   :  { %v676_v30 = vadd.f32 %v675_v33, %v674_v20 }
 0x2c6   :  { %v764_v51 = vpop.xlane.xlu2 %763 }
 0x2c7   :  { %v765_v54 = vrot.slane %v764_v51, 4  ;;  %v677_v9 = vrot.slane %v676_v30, 1 }
 0x2c8   :  { %v803_v36 = vpop.xlane.xlu0 %802 }
 0x2c9   :  { %v766_v45 = vadd.f32 %v765_v54, %v764_v51  ;;  %v804_v46 = vrot.slane %v803_v36, 4  ;;  %v678_v15 = vadd.f32 %v677_v9, %v676_v30 }
 0x2cb   :  { %v767_v8 = vrot.slane %v766_v45, 2  ;;  %v805_v1 = vadd.f32 %v804_v46, %v803_v36  ;;  %865 = vpush %v678_v15 }
 0x2cc   :  { %867 = vpush %v699_v55 }
 0x2cd   :  { %v768_v27 = vadd.f32 %v767_v8, %v766_v45  ;;  %v806_v38 = vrot.slane %v805_v1, 2  ;;  %869 = vpush %v718_v13 }
 0x2ce   :  { %871 = vpush %v751_v2 }
 0x2cf   :  { %v807_v56 = vadd.f32 %v806_v38, %v805_v1  ;;  %v769_v4 = vrot.slane %v768_v27, 1 }
 0x2d1   :  { %v770_v37 = vadd.f32 %v769_v4, %v768_v27  ;;  %v808_v58 = vrot.slane %v807_v56, 1 }
 0x2d3   :  { %873 = vpush %v770_v37  ;;  %v809_v60 = vadd.f32 %v808_v58, %v807_v56 }
 0x2d5   :  { %875 = vpush %v809_v60 }
 0x2fc   :  { %s866_s0 = spop %865 }
 0x2fd   :  { %v680_v16 = vstv %s866_s0  ;;  %s868_s15 = spop %867 }
 0x2fe   :  { %v681_v19 = vmul.f32 0.03125, %v680_v16  ;;  %s870_s3 = spop %869  ;;  %v701_v57 = vstv %s868_s15 }
 0x2ff   :  { %v720_v61 = vstv %s870_s3  ;;  %s872_s16 = spop %871 }
 0x300   :  { %v812_v6 = vsel %vm682_vm5, %v681_v19, %v701_v57  ;;  %v753_v63 = vstv %s872_s16 }
 0x301   :  { %v814_v59 = vsel %vm813_vm9, %v812_v6, %v720_v61 }
 0x302   :  { %v816_v62 = vsel %vm815_vm10, %v814_v59, %v753_v63 }
 0x304   :  { %s874_s20 = spop %873 }
 0x305   :  { %v772_v10 = vstv %s874_s20 }
 0x306   :  { %v818_v11 = vsel %vm817_vm11, %v816_v62, %v772_v10  ;;  %s876_s23 = spop %875 }
 0x307   :  { %v811_v7 = vstv %s876_s23 }
 0x308   :  { %v820_v12 = vsel %vm819_vm12, %v818_v11, %v811_v7 }
 0x309   :  { %822 = vst.msk [vmem:[#allocation5] sm:$0x1] %vm821_vm13, %v820_v12 }
 0x30a   :  { %833 = dma.vmem_to_hbm [thread:$0]  %s829_s22, 16, %s831_s19, [#allocation4]  }
 0x30b   :  { %936 = dma.done.wait [#allocation4], 16  }
 0x30c   :  { %937 = vsyncadd [#allocation4], 4294967280 }
 0x30d   :  { %838 = vsyncpa [#allocation3], 1 }
 0x30e   :  { %839 = vsyncpa [#allocation4], 1 }

</bundles_post_ra>
